<compile_context>
chip_gen: v7x
topology: tpu7x:2x2x1
jax: 0.10.0
libtpu: 0.0.40
codegen_flags: <defaults>
</compile_context>

<pallas_src>
import jax
import jax.numpy as jnp
from jax.experimental import pallas as pl
from jax.experimental.pallas import tpu as pltpu


def _round_up(v, m):
    return (v + m - 1) // m * m


def _pad_axis(x, axis, target):
    size = x.shape[axis]
    if size == target:
        return x
    widths = [(0, 0)] * x.ndim
    widths[axis] = (0, target - size)
    return jnp.pad(x, widths)


def roi_heads_kernel(x_ref, w6_ref, b6_ref, w7_ref, b7_ref, wh_ref, bh_ref,
                     out_ref, acc_ref):
    k = pl.program_id(1)

    # Zero the fc6 accumulator at the start of each K sweep.
    @pl.when(k == 0)
    def _():
        acc_ref[...] = jnp.zeros_like(acc_ref)

    # Streamed fc6 partial product: bf16 operands, f32 accumulate on the MXU.
    acc_ref[...] += jnp.dot(x_ref[...], w6_ref[...],
                            preferred_element_type=jnp.float32)

    # Epilogue: bias + ReLU, fc7, fused cls|bbox head; single lane-dense store.
    @pl.when(k == pl.num_programs(1) - 1)
    def _():
        h6 = jnp.maximum(acc_ref[...] + b6_ref[...], 0.0)
        h7 = jnp.dot(h6.astype(jnp.bfloat16), w7_ref[...],
                     preferred_element_type=jnp.float32)
        h7 = jnp.maximum(h7 + b7_ref[...], 0.0)
        out = jnp.dot(h7.astype(jnp.bfloat16), wh_ref[...],
                      preferred_element_type=jnp.float32) + bh_ref[...]
        out_ref[...] = out.astype(out_ref.dtype)


def roi_heads_forward(pooled, params, *, bm=128, tk=None):
    """pooled: [N_roi, C*P*P] float32 flattened RoI-pooled features.

    Returns (cls_logits [N_roi, n_cls], bbox_deltas [N_roi, 4*n_cls]) in f32.
    """
    w6, b6, w7, b7, wc, bc, wb, bb = params
    n_roi, in_dim = pooled.shape
    hidden = w6.shape[1]
    n_cls = wc.shape[1]
    n_box = wb.shape[1]
    head_dim = n_cls + n_box

    if tk is None:
        tk = min(_round_up(in_dim, 128), 2048)

    # --- fuse the two predictor heads, pad output lanes to a multiple of 128 ---
    head_pad = _round_up(head_dim, 128)
    w_head = _pad_axis(jnp.concatenate([wc, wb], axis=1), 1, head_pad)
    b_head = _pad_axis(jnp.concatenate([bc, bb], axis=1), 1, head_pad)

    # --- pad M (RoIs) to a multiple of bm, K (in_dim) to a multiple of tk ---
    m_pad = _round_up(n_roi, bm)
    k_pad = _round_up(in_dim, tk)
    x_p = _pad_axis(_pad_axis(pooled, 0, m_pad), 1, k_pad)
    w6_p = _pad_axis(w6, 0, k_pad)

    # --- bf16 operands for the MXU; biases stay f32 (v5e VPU has no bf16) ---
    x_bf = x_p.astype(jnp.bfloat16)
    w6_bf = w6_p.astype(jnp.bfloat16)
    w7_bf = w7.astype(jnp.bfloat16)
    wh_bf = w_head.astype(jnp.bfloat16)

    m_blocks = m_pad // bm
    k_blocks = k_pad // tk

    out = pl.pallas_call(
        roi_heads_kernel,
        out_shape=jax.ShapeDtypeStruct((m_pad, head_pad), jnp.float32),
        grid_spec=pltpu.PrefetchScalarGridSpec(
            num_scalar_prefetch=0,
            grid=(m_blocks, k_blocks),
            in_specs=[
                # K-streamed inputs (double-buffered by the pipeline).
                pl.BlockSpec((bm, tk), lambda m, k: (m, k)),       # x
                pl.BlockSpec((tk, hidden), lambda m, k: (k, 0)),   # w6
                # VMEM-resident small weights / biases (constant index maps).
                pl.BlockSpec((1, hidden), lambda m, k: (0, 0)),    # b6
                pl.BlockSpec((hidden, hidden), lambda m, k: (0, 0)),  # w7
                pl.BlockSpec((1, hidden), lambda m, k: (0, 0)),    # b7
                pl.BlockSpec((hidden, head_pad), lambda m, k: (0, 0)),  # w_head
                pl.BlockSpec((1, head_pad), lambda m, k: (0, 0)),  # b_head
            ],
            out_specs=pl.BlockSpec((bm, head_pad), lambda m, k: (m, 0)),
            scratch_shapes=[pltpu.VMEM((bm, hidden), jnp.float32)],
        ),
        compiler_params=pltpu.CompilerParams(
            dimension_semantics=("parallel", "arbitrary"),
            vmem_limit_bytes=48 * 1024 * 1024,
        ),
    )(x_bf, w6_bf, b6, w7_bf, b7, wh_bf, b_head)

    # Strip M padding and split the fused head back into cls / bbox.
    cls_logits = out[:n_roi, :n_cls]
    bbox_deltas = out[:n_roi, n_cls:head_dim]
    return cls_logits, bbox_deltas


def make_params(key, in_dim, hidden, num_classes):
    ks = jax.random.split(key, 8)
    scale = lambda fan_in: 1.0 / jnp.sqrt(jnp.float32(fan_in))
    w6 = jax.random.normal(ks[0], (in_dim, hidden), jnp.float32) * scale(in_dim)
    b6 = jax.random.normal(ks[1], (1, hidden), jnp.float32) * 0.01
    w7 = jax.random.normal(ks[2], (hidden, hidden), jnp.float32) * scale(hidden)
    b7 = jax.random.normal(ks[3], (1, hidden), jnp.float32) * 0.01
    wc = jax.random.normal(ks[4], (hidden, num_classes), jnp.float32) * scale(hidden)
    bc = jax.random.normal(ks[5], (1, num_classes), jnp.float32) * 0.01
    wb = jax.random.normal(ks[6], (hidden, 4 * num_classes), jnp.float32) * scale(hidden)
    bb = jax.random.normal(ks[7], (1, 4 * num_classes), jnp.float32) * 0.01
    return (w6, b6, w7, b7, wc, bc, wb, bb)


def reference_forward(pooled, params):
    """Pure-JAX reference using the same bf16-operand / f32-accumulate recipe."""
    w6, b6, w7, b7, wc, bc, wb, bb = params
    bf = lambda a: a.astype(jnp.bfloat16)
    h6 = jnp.maximum(
        jnp.dot(bf(pooled), bf(w6), preferred_element_type=jnp.float32) + b6, 0.0)
    h7 = jnp.maximum(
        jnp.dot(bf(h6), bf(w7), preferred_element_type=jnp.float32) + b7, 0.0)
    cls = jnp.dot(bf(h7), bf(wc), preferred_element_type=jnp.float32) + bc
    bbox = jnp.dot(bf(h7), bf(wb), preferred_element_type=jnp.float32) + bb
    return cls, bbox


if __name__ == "__main__":
    key = jax.random.PRNGKey(0)
    k_in, k_par = jax.random.split(key)

    # Small synthetic RoI-pooled feature map: N_roi=16, C=4, P=8 -> in_dim=256
    n_roi, C, P = 16, 4, 8
    in_dim = C * P * P
    hidden = 128
    num_classes = 5

    pooled_nchw = jax.random.normal(k_in, (n_roi, C, P, P), jnp.float32)
    pooled = pooled_nchw.reshape(n_roi, in_dim)  # row-major NCHW flatten

    params = make_params(k_par, in_dim, hidden, num_classes)

    # tk=128 so the small test exercises the multi-step K accumulation path.
    cls_logits, bbox_deltas = roi_heads_forward(pooled, params, bm=128, tk=128)
    jax.block_until_ready((cls_logits, bbox_deltas))

    # correctness check against pure-JAX reference (same bf16/f32 recipe)
    ref_cls, ref_bbox = reference_forward(pooled, params)
    assert cls_logits.shape == (n_roi, num_classes)
    assert bbox_deltas.shape == (n_roi, 4 * num_classes)
    assert jnp.allclose(cls_logits, ref_cls, atol=1e-2, rtol=1e-2)
    assert jnp.allclose(bbox_deltas, ref_bbox, atol=1e-2, rtol=1e-2)

    print("KERNEL_OK")
</pallas_src>

<mosaic_0001>
module attributes {stable_mosaic.version = 11 : i64} {
  func.func @roi_heads_kernel(%arg0: i32, %arg1: i32, %arg2: memref<128x128xbf16, #tpu.memory_space<vmem>>, %arg3: memref<128x128xbf16, #tpu.memory_space<vmem>>, %arg4: memref<1x128xf32, #tpu.memory_space<vmem>>, %arg5: memref<128x128xbf16, #tpu.memory_space<vmem>>, %arg6: memref<1x128xf32, #tpu.memory_space<vmem>>, %arg7: memref<128x128xbf16, #tpu.memory_space<vmem>>, %arg8: memref<1x128xf32, #tpu.memory_space<vmem>>, %arg9: memref<128x128xf32, #tpu.memory_space<vmem>>, %arg10: memref<128x128xf32, #tpu.memory_space<vmem>>) attributes {dimension_semantics = [#tpu.dimension_semantics<parallel>, #tpu.dimension_semantics<arbitrary>], iteration_bounds = array<i64: 1, 2>, scalar_prefetch = 0 : i64, scratch_operands = 1 : i64, tpu.core_type = #tpu.core_type<tc>, window_params = [{transform_indices = @transform_0, window_bounds = array<i64: 128, 128>}, {transform_indices = @transform_1, window_bounds = array<i64: 128, 128>}, {pipeline_mode = #tpu.pipeline_mode<synchronous>, transform_indices = @transform_2, window_bounds = array<i64: 1, 128>}, {pipeline_mode = #tpu.pipeline_mode<synchronous>, transform_indices = @transform_3, window_bounds = array<i64: 128, 128>}, {pipeline_mode = #tpu.pipeline_mode<synchronous>, transform_indices = @transform_4, window_bounds = array<i64: 1, 128>}, {pipeline_mode = #tpu.pipeline_mode<synchronous>, transform_indices = @transform_5, window_bounds = array<i64: 128, 128>}, {pipeline_mode = #tpu.pipeline_mode<synchronous>, transform_indices = @transform_6, window_bounds = array<i64: 1, 128>}, {transform_indices = @transform_7, window_bounds = array<i64: 128, 128>}]} {
    %c0_i32 = arith.constant 0 : i32
    %0 = arith.cmpi eq, %arg1, %c0_i32 : i32
    %1 = arith.extui %0 : i1 to i32
    %c0_i32_0 = arith.constant 0 : i32
    %2 = arith.cmpi ne, %1, %c0_i32_0 : i32
    scf.if %2 {
      %cst_9 = arith.constant 0.000000e+00 : f32
      %12 = vector.broadcast %cst_9 : f32 to vector<128x128xf32>
      %c0_10 = arith.constant 0 : index
      %c0_11 = arith.constant 0 : index
      %13 = vector.load %arg10[%c0_10, %c0_11] : memref<128x128xf32, #tpu.memory_space<vmem>>, vector<128x128xf32>
      tpu.vector_store %arg10[%c0_10, %c0_11], %12 {strides = array<i32>} : memref<128x128xf32, #tpu.memory_space<vmem>>, vector<128x128xf32>,
    } else {
    }
    %c0 = arith.constant 0 : index
    %c0_1 = arith.constant 0 : index
    %3 = vector.load %arg10[%c0, %c0_1] : memref<128x128xf32, #tpu.memory_space<vmem>>, vector<128x128xf32>
    %c0_2 = arith.constant 0 : index
    %c0_3 = arith.constant 0 : index
    %4 = vector.load %arg2[%c0_2, %c0_3] : memref<128x128xbf16, #tpu.memory_space<vmem>>, vector<128x128xbf16>
    %c0_4 = arith.constant 0 : index
    %c0_5 = arith.constant 0 : index
    %5 = vector.load %arg3[%c0_4, %c0_5] : memref<128x128xbf16, #tpu.memory_space<vmem>>, vector<128x128xbf16>
    %cst = arith.constant dense<0.000000e+00> : vector<128x128xf32>
    %6 = tpu.matmul %4, %5, %cst {dimension_numbers = #tpu.dot_dimension_numbers<[1], [0], [0], [1], [0, 0, 1, 1], [], []>} : vector<128x128xbf16>, vector<128x128xbf16>, vector<128x128xf32> -> vector<128x128xf32>
    %7 = arith.addf %3, %6 : vector<128x128xf32>
    %c0_6 = arith.constant 0 : index
    %c0_7 = arith.constant 0 : index
    %8 = vector.load %arg10[%c0_6, %c0_7] : memref<128x128xf32, #tpu.memory_space<vmem>>, vector<128x128xf32>
    tpu.vector_store %arg10[%c0_6, %c0_7], %7 {strides = array<i32>} : memref<128x128xf32, #tpu.memory_space<vmem>>, vector<128x128xf32>,
    %c1_i32 = arith.constant 1 : i32
    %9 = arith.cmpi eq, %arg1, %c1_i32 : i32
    %10 = arith.extui %9 : i1 to i32
    %c0_i32_8 = arith.constant 0 : i32
    %11 = arith.cmpi ne, %10, %c0_i32_8 : i32
    scf.if %11 {
      %c0_9 = arith.constant 0 : index
      %c0_10 = arith.constant 0 : index
      %12 = vector.load %arg10[%c0_9, %c0_10] : memref<128x128xf32, #tpu.memory_space<vmem>>, vector<128x128xf32>
      %c0_11 = arith.constant 0 : index
      %c0_12 = arith.constant 0 : index
      %13 = vector.load %arg4[%c0_11, %c0_12] : memref<1x128xf32, #tpu.memory_space<vmem>>, vector<1x128xf32>
      %14 = vector.broadcast %13 : vector<1x128xf32> to vector<128x128xf32>
      %15 = arith.addf %12, %14 : vector<128x128xf32>
      %cst_13 = arith.constant 0.000000e+00 : f32
      %16 = vector.broadcast %cst_13 : f32 to vector<128x128xf32>
      %17 = arith.maximumf %15, %16 : vector<128x128xf32>
      %18 = arith.truncf %17 : vector<128x128xf32> to vector<128x128xbf16>
      %c0_14 = arith.constant 0 : index
      %c0_15 = arith.constant 0 : index
      %19 = vector.load %arg5[%c0_14, %c0_15] : memref<128x128xbf16, #tpu.memory_space<vmem>>, vector<128x128xbf16>
      %cst_16 = arith.constant dense<0.000000e+00> : vector<128x128xf32>
      %20 = tpu.matmul %18, %19, %cst_16 {dimension_numbers = #tpu.dot_dimension_numbers<[1], [0], [0], [1], [0, 0, 1, 1], [], []>} : vector<128x128xbf16>, vector<128x128xbf16>, vector<128x128xf32> -> vector<128x128xf32>
      %c0_17 = arith.constant 0 : index
      %c0_18 = arith.constant 0 : index
      %21 = vector.load %arg6[%c0_17, %c0_18] : memref<1x128xf32, #tpu.memory_space<vmem>>, vector<1x128xf32>
      %22 = vector.broadcast %21 : vector<1x128xf32> to vector<128x128xf32>
      %23 = arith.addf %20, %22 : vector<128x128xf32>
      %cst_19 = arith.constant 0.000000e+00 : f32
      %24 = vector.broadcast %cst_19 : f32 to vector<128x128xf32>
      %25 = arith.maximumf %23, %24 : vector<128x128xf32>
      %26 = arith.truncf %25 : vector<128x128xf32> to vector<128x128xbf16>
      %c0_20 = arith.constant 0 : index
      %c0_21 = arith.constant 0 : index
      %27 = vector.load %arg7[%c0_20, %c0_21] : memref<128x128xbf16, #tpu.memory_space<vmem>>, vector<128x128xbf16>
      %cst_22 = arith.constant dense<0.000000e+00> : vector<128x128xf32>
      %28 = tpu.matmul %26, %27, %cst_22 {dimension_numbers = #tpu.dot_dimension_numbers<[1], [0], [0], [1], [0, 0, 1, 1], [], []>} : vector<128x128xbf16>, vector<128x128xbf16>, vector<128x128xf32> -> vector<128x128xf32>
      %c0_23 = arith.constant 0 : index
      %c0_24 = arith.constant 0 : index
      %29 = vector.load %arg8[%c0_23, %c0_24] : memref<1x128xf32, #tpu.memory_space<vmem>>, vector<1x128xf32>
      %30 = vector.broadcast %29 : vector<1x128xf32> to vector<128x128xf32>
      %31 = arith.addf %28, %30 : vector<128x128xf32>
      %c0_25 = arith.constant 0 : index
      %c0_26 = arith.constant 0 : index
      %32 = vector.load %arg9[%c0_25, %c0_26] : memref<128x128xf32, #tpu.memory_space<vmem>>, vector<128x128xf32>
      tpu.vector_store %arg9[%c0_25, %c0_26], %31 {strides = array<i32>} : memref<128x128xf32, #tpu.memory_space<vmem>>, vector<128x128xf32>,
    } else {
    }
    return
  }
  func.func @transform_0(%arg0: i32, %arg1: i32) -> (i32, i32) {
    %c0_i32 = arith.constant 0 : i32
    return %arg0, %arg1 : i32, i32
  }
  func.func @transform_1(%arg0: i32, %arg1: i32) -> (i32, i32) {
    %c0_i32 = arith.constant 0 : i32
    %c0_i32_0 = arith.constant 0 : i32
    return %arg1, %c0_i32 : i32, i32
  }
  func.func @transform_2(%arg0: i32, %arg1: i32) -> (i32, i32) {
    %c0_i32 = arith.constant 0 : i32
    %c0_i32_0 = arith.constant 0 : i32
    %c0_i32_1 = arith.constant 0 : i32
    return %c0_i32, %c0_i32_0 : i32, i32
  }
  func.func @transform_3(%arg0: i32, %arg1: i32) -> (i32, i32) {
    %c0_i32 = arith.constant 0 : i32
    %c0_i32_0 = arith.constant 0 : i32
    %c0_i32_1 = arith.constant 0 : i32
    return %c0_i32, %c0_i32_0 : i32, i32
  }
  func.func @transform_4(%arg0: i32, %arg1: i32) -> (i32, i32) {
    %c0_i32 = arith.constant 0 : i32
    %c0_i32_0 = arith.constant 0 : i32
    %c0_i32_1 = arith.constant 0 : i32
    return %c0_i32, %c0_i32_0 : i32, i32
  }
  func.func @transform_5(%arg0: i32, %arg1: i32) -> (i32, i32) {
    %c0_i32 = arith.constant 0 : i32
    %c0_i32_0 = arith.constant 0 : i32
    %c0_i32_1 = arith.constant 0 : i32
    return %c0_i32, %c0_i32_0 : i32, i32
  }
  func.func @transform_6(%arg0: i32, %arg1: i32) -> (i32, i32) {
    %c0_i32 = arith.constant 0 : i32
    %c0_i32_0 = arith.constant 0 : i32
    %c0_i32_1 = arith.constant 0 : i32
    return %c0_i32, %c0_i32_0 : i32, i32
  }
  func.func @transform_7(%arg0: i32, %arg1: i32) -> (i32, i32) {
    %c0_i32 = arith.constant 0 : i32
    %c0_i32_0 = arith.constant 0 : i32
    return %arg0, %c0_i32 : i32, i32
  }
}

</mosaic_0001>

<bundles_post_ra>
// kernel: tpu_custom_call.1
= control target key start
LH: loop header
LB: loop body
LE: loop exit
PB: predicated region body
PF: predicated region fallthrough
CT: control target
= control target key end

     0   :  { %s2167_s0 = inlined_call_operand.hbm [shape: bf16[128,256], index: 0, kind: input, shape index: {}]   ;;  %s2168_s1 = inlined_call_operand.hbm [shape: bf16[256,128], index: 1, kind: input, shape index: {}]   ;;  %s2169_s2 = inlined_call_operand.vmem [shape: f32[1,128], index: 2, kind: input, shape index: {}]   ;;  %s2170_s3 = inlined_call_operand.hbm [shape: bf16[128,128], index: 3, kind: input, shape index: {}]   ;;  %s2171_s4 = inlined_call_operand.vmem [shape: f32[1,128], index: 4, kind: input, shape index: {}]   ;;  %s2172_s5 = inlined_call_operand.hbm [shape: bf16[128,128], index: 5, kind: input, shape index: {}]   ;;  %s2173_s6 = inlined_call_operand.vmem [shape: f32[1,128], index: 6, kind: input, shape index: {}]   ;;  %s2174_s7 = inlined_call_operand.hbm [shape: f32[128,128], index: 7, kind: output, shape index: {}]  }
   0x1   :  { %2183 = sst [smem:[#allocation18_spill]] %s2167_s0 }
   0x2   :  { %2184 = sst [smem:[#allocation19_spill]] %s2170_s3 }
   0x3   :  { %2185 = sst [smem:[#allocation20_spill]] %s2172_s5 }
   0x4   :  { %12 = vsyncpa [#allocation4], 0 }
   0x5   :  { %14 = vsyncpa [#allocation4 + $0x1], 0 }
   0x6   :  { %15 = vsyncpa [#allocation7], 0 }
   0x7   :  { %17 = vsyncpa [#allocation7 + $0x1], 0 }
   0x8   :  { %18 = vsyncpa [#allocation10], 0 }
   0x9   :  { %19 = vsyncpa [#allocation5], 0  ;;  %s1836_s24 = smov 0   ;;  %s1838_s25 = smov 0  }
   0xa   :  { %s1840_s26 = smov 0   ;;  %s1842_s27 = smov 0  }
   0xb   :  { %s1844_s28 = smov 0   ;;  %s1846_s29 = smov 0  }
   0xc LB: > { %s1865_s30 = sadd.s32 4294967295, %s1783_s29   ;;  %p53_p0 = scmp.ne.s32.totalorder %s1771_s26, %s1767_s25  ;;  %s1783_s29 = sphi %s1846_s29, %s25_s29   ;;  %s1779_s28 = sphi %s1844_s28, %s2209_s28   ;;  %s1775_s27 = sphi %s1842_s27, %s2208_s27   ;;  %s1771_s26 = sphi %s1840_s26, %s2207_s26   ;;  %s1767_s25 = sphi %s1838_s25, %s2206_s25   ;;  %s1763_s24 = sphi %s1836_s24, %s2205_s24  }
   0xd   : > { %p54_p1 = scmp.eq.s32.totalorder %s1783_s29, 0  ;;  %p59_p2 = scmp.ne.s32.totalorder %s1767_s25, %s1763_s24 }
   0xe   : > { %p2175_p3 = scmp.eq.s32.totalorder %s1865_s30, 0  ;;  %p1233_p5 = scmp.ge.s32.totalorder %s1783_s29, 1 }
   0xf   : > { %p55_p4 = por %p54_p1, %p53_p0  ;;  %p227_p7 = scmp.lt.s32.totalorder %s1783_s29, 3 }
  0x10   : > { %p1876_p6 = por %p2175_p3, %p59_p2  ;;  %s1785_s11 = smov [#allocation8]  }
  0x11   : > { %p1881_p8 = pnand %p1233_p5, %p227_p7  ;;  %s242_s12 = sshll.u32 %s1785_s11, 4  ;;  %s1885_s12 = int_to_ptr.vmem [resolvable:$true] %s242_s12 }
  0x12   : > { %s2186_s9 = scalar_select %p1876_p6, 1, 0 }
  0x13   : > { %s2187_s10 = scalar_select %p1881_p8, 1, 0 }
  0x14   : > { %p1465_p9 = pneg %p1881_p8  ;;  %p1481_p10 = scmp.lt.s32.totalorder %s1783_s29, 2 }
  0x15   : > { %s1786_s15 = smov [#allocation9]   ;;  %s2190_s3 = sld [smem:[#allocation19_spill]] }
  0x16   : > { %p1892_p11 = pnand %p1465_p9, %p2175_p3  ;;  %p1896_p12 = pnand %p1481_p10, %p55_p4 }
  0x17   : > { %s258_s16 = sshll.u32 %s1786_s15, 4  ;;  %s1900_s16 = int_to_ptr.vmem [resolvable:$true] %s258_s16 }
  0x18   : > { %p1577_p0 = pneg %p1892_p11 }
  0x1b   : > { %s1575_s19 = scalar_lea.hbm %s2190_s3, 1024 }
  0x1c   : > { %p1576_p13 = scmp.ne.s32.totalorder %s2190_s3, %s1575_s19  ;;  %p1582_p4 = scmp.lt.u32.totalorder %s1575_s19, %s2190_s3 }
  0x1e   : > { %p1578_p1 = pnand %p1577_p0, %p1576_p13 }
  0x20   : > { %p1579_p2 = pneg %p1578_p1 }
  0x22   : > { %p1584_p5 = pnand %p1582_p4, %p1579_p2 }
  0x24   : > { %1587 = shalt.err (!%p1584_p5)
}
  0x25   : > { %s1588_s24 = scalar_lea.vmem %s1885_s12, 1024  ;;  %p1596_p3 = scmp.lt.s32.totalorder %s1885_s12, %s1885_s12 }
  0x26   : > { %p1589_p7 = scmp.ne.s32.totalorder %s1885_s12, %s1588_s24  ;;  %p1597_p13 = scmp.lt.s32.totalorder %s1588_s24, %s1588_s24 }
  0x28   : > { %p1591_p9 = pnand %p1589_p7, %p1577_p0  ;;  %p1598_p1 = por %p1597_p13, %p1596_p3 }
  0x2a   : > { %p1592_p10 = pneg %p1591_p9 }
  0x2c   : > { %p1599_p6 = pnand %p1598_p1, %p1592_p10 }
  0x2e   : > { %1602 = shalt.err (!%p1599_p6)
}
  0x2f   : > { %s2177_s11 = smov 64   ;;  %s2179_s15 = smov 4  }
  0x30   : > { %1468 = dma.hbm_to_vmem [thread:$0]  (!%p1892_p11), %s2190_s3, 1024, %s1885_s12, [#allocation7], %s2177_s11, %s2177_s11, %s2179_s15  }
  0x31   : > { %s2191_s5 = sld [smem:[#allocation20_spill]] }
  0x37   : > { %s1603_s21 = scalar_lea.hbm %s2191_s5, 1024 }
  0x38   : > { %p1604_p3 = scmp.ne.s32.totalorder %s2191_s5, %s1603_s21  ;;  %p1610_p4 = scmp.lt.u32.totalorder %s1603_s21, %s2191_s5 }
  0x3a   : > { %p1606_p6 = pnand %p1604_p3, %p1577_p0 }
  0x3c   : > { %p1607_p2 = pneg %p1606_p6 }
  0x3e   : > { %p1612_p5 = pnand %p1610_p4, %p1607_p2 }
  0x40   : > { %1615 = shalt.err (!%p1612_p5)
}
  0x41   : > { %s1616_s12 = scalar_lea.vmem %s1900_s16, 1024  ;;  %p1624_p13 = scmp.lt.s32.totalorder %s1900_s16, %s1900_s16 }
  0x42   : > { %p1617_p7 = scmp.ne.s32.totalorder %s1900_s16, %s1616_s12  ;;  %p1625_p1 = scmp.lt.s32.totalorder %s1616_s12, %s1616_s12 }
  0x44   : > { %p1619_p9 = pnand %p1617_p7, %p1577_p0  ;;  %p1626_p3 = por %p1625_p1, %p1624_p13 }
  0x46   : > { %p1620_p10 = pneg %p1619_p9 }
  0x48   : > { %p1627_p6 = pnand %p1626_p3, %p1620_p10 }
  0x4a   : > { %1630 = shalt.err (!%p1627_p6)
}
  0x4b   : > { %1471 = dma.hbm_to_vmem [thread:$0]  (!%p1892_p11), %s2191_s5, 1024, %s1900_s16, [#allocation10], %s2177_s11, %s2177_s11, %s2179_s15  }
  0x4c   : > { %s275_s18 = sand.u32 1, %s1771_s26   ;;  %s34_s19 = sadd.s32 1, %s1779_s28 }
  0x4d   : > { %p35_p0 = scmp.ge.s32.totalorder %s34_s19, 2  ;;  %s1962_s20 = sshll.u32 %s275_s18, 6 }
  0x4e   : > { %s1238_s13 = sshll.u32 %s1779_s28, 6  ;;  %s2193_s0 = sld [smem:[#allocation18_spill]] }
  0x4f   : > { %s2211_s19 = smov (%p35_p0, %s34_s19), 0  ;;  %s279_s16 = scalar_lea.vmem [#allocation3], %s1962_s20 }
  0x50   : > { %2192 = sst [smem:[#allocation17_spill]] %s2211_s19  ;;  %s288_s24 = sshll.u32 %s279_s16, 4  ;;  %s1975_s24 = int_to_ptr.vmem [resolvable:$true] %s288_s24 }
  0x51   : > { %s42_s12 = ssub.s32 %s1779_s28, %s2211_s19  ;;  %s1981_s17 = scalar_lea.sflag [#allocation4], %s275_s18 }
  0x52   : > { %p1977_p11 = scmp.eq.s32.totalorder %s42_s12, 0  ;;  %p1633_p4 = pneg %p1896_p12 }
  0x54   : > { %s1970_s23 = scalar_lea.hbm %s2193_s0, %s1238_s13  ;;  %s1636_s22 = scalar_lea.hbm %s2193_s0, 2048 }
  0x55   : > { %s1631_s11 = scalar_lea.hbm %s1970_s23, 1024  ;;  %p1637_p9 = scmp.lt.u32.totalorder %s1970_s23, %s2193_s0 }
  0x56   : > { %p1632_p2 = scmp.ne.s32.totalorder %s1970_s23, %s1631_s11  ;;  %p1638_p10 = scmp.lt.u32.totalorder %s1636_s22, %s1631_s11 }
  0x57   : > { %p1640_p1 = scmp.lt.u32.totalorder %s1631_s11, %s1970_s23 }
  0x58   : > { %p1634_p5 = pnand %p1633_p4, %p1632_p2  ;;  %p1639_p13 = por %p1638_p10, %p1637_p9 }
  0x5a   : > { %p1635_p7 = pneg %p1634_p5  ;;  %p1641_p3 = por %p1640_p1, %p1639_p13 }
  0x5c   : > { %p1642_p6 = pnand %p1641_p3, %p1635_p7 }
  0x5e   : > { %1645 = shalt.err (!%p1642_p6)
}
  0x5f   : > { %s1646_s18 = scalar_lea.vmem %s1975_s24, 1024  ;;  %s1789_s12 = smov [#allocation3]  }
  0x60   : > { %p1647_p0 = scmp.ne.s32.totalorder %s1975_s24, %s1646_s18  ;;  %s1651_s13 = sshll.u32 %s1789_s12, 4  ;;  %s1652_s13 = int_to_ptr.vmem [resolvable:$false] %s1651_s13 }
  0x61   : > { %s1653_s15 = scalar_lea.vmem %s1652_s13, 2048  ;;  %p1654_p8 = scmp.lt.s32.totalorder %s1975_s24, %s1652_s13 }
  0x62   : > { %p1649_p2 = pnand %p1647_p0, %p1633_p4  ;;  %p1655_p9 = scmp.lt.s32.totalorder %s1653_s15, %s1646_s18 }
  0x64   : > { %p1650_p5 = pneg %p1649_p2  ;;  %p1656_p10 = por %p1655_p9, %p1654_p8 }
  0x66   : > { %p1657_p13 = pnand %p1656_p10, %p1650_p5 }
  0x68   : > { %1660 = shalt.err (!%p1657_p13)
}
  0x69   : > { %s1790_s11 = smov 128   ;;  %s2195_s21 = smov 4  }
  0x6a   : > { %s2196_s22 = smov 64   ;;  %s2197_s16 = sadd.s32 1, %s1771_s26 }
  0x6b   : > { %1475 = dma.hbm_to_vmem [thread:$0]  (!%p1896_p12), %s1970_s23, 1024, %s1975_s24, %s1981_s17, %s1790_s11, %s2196_s22, %s2195_s21  }
  0x6c   : > { %s2016_s18 = scalar_select %p1977_p11, %s1771_s26, %s2197_s16  }
  0x6d   : > { %s298_s12 = sand.u32 1, %s1783_s29   ;;  %s1288_s13 = sshll.u32 %s1779_s28, 10 }
  0x6e   : > { %s2023_s3 = scalar_lea.hbm %s2168_s1, %s1288_s13  ;;  %s302_s5 = scalar_lea.vmem [#allocation6], %s1962_s20 }
  0x6f   : > { %s309_s19 = sshll.u32 %s302_s5, 4  ;;  %s2028_s23 = scalar_lea.sflag [#allocation7], %s298_s12  ;;  %s2026_s19 = int_to_ptr.vmem [resolvable:$true] %s309_s19 }
  0x70   : > { %s1661_s24 = scalar_lea.hbm %s2023_s3, 1024  ;;  %s1666_s17 = scalar_lea.hbm %s2168_s1, 2048 }
  0x71   : > { %p1662_p8 = scmp.ne.s32.totalorder %s2023_s3, %s1661_s24  ;;  %p1667_p1 = scmp.lt.u32.totalorder %s2023_s3, %s2168_s1 }
  0x72   : > { %p1668_p3 = scmp.lt.u32.totalorder %s1666_s17, %s1661_s24  ;;  %p1670_p0 = scmp.lt.u32.totalorder %s1661_s24, %s2023_s3 }
  0x73   : > { %p1664_p11 = pnand %p1662_p8, %p1633_p4 }
  0x74   : > { %p1669_p6 = por %p1668_p3, %p1667_p1 }
  0x75   : > { %p1665_p7 = pneg %p1664_p11 }
  0x76   : > { %p1671_p2 = por %p1670_p0, %p1669_p6 }
  0x78   : > { %p1672_p5 = pnand %p1671_p2, %p1665_p7 }
  0x7a   : > { %1675 = shalt.err (!%p1672_p5)
}
  0x7b   : > { %s1676_s5 = scalar_lea.vmem %s2026_s19, 1024  ;;  %s1791_s20 = smov [#allocation6]  }
  0x7c   : > { %p1677_p9 = scmp.ne.s32.totalorder %s2026_s19, %s1676_s5  ;;  %s1681_s12 = sshll.u32 %s1791_s20, 4  ;;  %s1682_s12 = int_to_ptr.vmem [resolvable:$false] %s1681_s12 }
  0x7d   : > { %s1683_s13 = scalar_lea.vmem %s1682_s12, 2048  ;;  %p1684_p8 = scmp.lt.s32.totalorder %s2026_s19, %s1682_s12 }
  0x7e   : > { %p1679_p10 = pnand %p1677_p9, %p1633_p4  ;;  %p1685_p11 = scmp.lt.s32.totalorder %s1683_s13, %s1676_s5 }
  0x80   : > { %p1680_p13 = pneg %p1679_p10  ;;  %p1686_p1 = por %p1685_p11, %p1684_p8 }
  0x82   : > { %p1687_p3 = pnand %p1686_p1, %p1680_p13 }
  0x84   : > { %1690 = shalt.err (!%p1687_p3)
}
  0x85   : > { %1478 = dma.hbm_to_vmem [thread:$0]  (!%p1896_p12), %s2023_s3, 1024, %s2026_s19, %s2028_s23, %s2196_s22, %s2196_s22, %s2195_s21  }
  0x86   : > { %p2198_p4 = scmp.ne.s32.totalorder %s2187_s10, 0 }
  0x87   : > { %s323_s15 = sand.u32 (!%p2198_p4), 1, %s1767_s25   ;;  %p2199_p7 = scmp.ne.s32.totalorder (!%p2198_p4), %s2186_s9, 0 }
  0x88   : > { %321 = sbr.rel (%p2198_p4) target bundleno = 919 (0x397), region = 48  ;;  %s1243_s24 = sshll.u32 (!%p2198_p4), %s323_s15, 6 }
  0x89   : > { %s324_s8 = scalar_lea.sflag (!%p2198_p4), [#allocation4], %s323_s15  ;;  %s2060_s0 = scalar_lea.vmem (!%p2198_p4), [#allocation3], %s1243_s24 }
  0x8f   : > { %1742 = dma.done.wait (%p2199_p7), %s324_s8, 1024  }
  0x90   : > { %1744 = vsyncadd (%p2199_p7), %s324_s8, 4294966272  ;;  %s332_s14 = sand.u32 1, %s1865_s30   ;;  %s2067_s3 = scalar_lea.vmem [#allocation6], %s1243_s24 }
  0x91   : > { %s333_s17 = scalar_lea.sflag [#allocation7], %s332_s14 }
  0x92   : > { %1746 = dma.done.wait (%p2199_p7), %s333_s17, 1024  }
  0x93   : > { %1748 = vsyncadd (%p2199_p7), %s333_s17, 4294966272  ;;  %p2200_p12 = scmp.eq.s32.totalorder %s1865_s30, 0 }
  0x95   : > { %1750 = dma.done.wait (%p2200_p12), [#allocation7], 1024   ;;  %p2201_p6 = pmov %p2200_p12 }
  0x97   : > { %1752 = vsyncadd (%p2201_p6), [#allocation7], 4294966272  ;;  %p2202_p0 = pmov %p2201_p6 }
  0x99   : > { %1754 = dma.done.wait (%p2202_p0), [#allocation10], 1024   ;;  %p2203_p2 = pmov %p2202_p0 }
  0x9a   : > { %p1247_p5 = scmp.ne.s32.totalorder %s1775_s27, 0 }
  0x9b   : > { %1756 = vsyncadd (%p2203_p2), [#allocation10], 4294966272  ;;  %v1792_v0 = vmov (!%p1247_p5), 0.0  }
  0x9c   : > { %382 = sbr.rel (%p1247_p5) target bundleno = 164 (0xa4), region = 68  ;;  %383 = vst [vmem:[#allocation2] sm:$0xff] (!%p1247_p5), %v1792_v0  ;;  %384 = vst [vmem:[#allocation2 + $0x8] sm:$0xff] (!%p1247_p5), %v1792_v0 }
  0x9d   : > { %385 = vst [vmem:[#allocation2 + $0x10] sm:$0xff] (!%p1247_p5), %v1792_v0  ;;  %386 = vst [vmem:[#allocation2 + $0x18] sm:$0xff] (!%p1247_p5), %v1792_v0 }
  0x9e   : > { %387 = vst [vmem:[#allocation2 + $0x20] sm:$0xff] (!%p1247_p5), %v1792_v0  ;;  %388 = vst [vmem:[#allocation2 + $0x28] sm:$0xff] (!%p1247_p5), %v1792_v0 }
  0x9f   : > { %389 = vst [vmem:[#allocation2 + $0x30] sm:$0xff] (!%p1247_p5), %v1792_v0  ;;  %390 = vst [vmem:[#allocation2 + $0x38] sm:$0xff] (!%p1247_p5), %v1792_v0 }
  0xa0   : > { %391 = vst [vmem:[#allocation2 + $0x40] sm:$0xff] (!%p1247_p5), %v1792_v0  ;;  %392 = vst [vmem:[#allocation2 + $0x48] sm:$0xff] (!%p1247_p5), %v1792_v0 }
  0xa1   : > { %393 = vst [vmem:[#allocation2 + $0x50] sm:$0xff] (!%p1247_p5), %v1792_v0  ;;  %394 = vst [vmem:[#allocation2 + $0x58] sm:$0xff] (!%p1247_p5), %v1792_v0 }
  0xa2   : > { %395 = vst [vmem:[#allocation2 + $0x60] sm:$0xff] (!%p1247_p5), %v1792_v0  ;;  %396 = vst [vmem:[#allocation2 + $0x68] sm:$0xff] (!%p1247_p5), %v1792_v0 }
  0xa3   : > { %397 = vst [vmem:[#allocation2 + $0x70] sm:$0xff] %v1792_v0  ;;  %398 = vst [vmem:[#allocation2 + $0x78] sm:$0xff] %v1792_v0 }
  0xa4 PF: > { %v1543_v1 = vld [vmem:[%s2067_s3] sm:$0xff]   ;;  %v1544_v2 = vld [vmem:[%s2067_s3 + $0x8] sm:$0xff]   ;;  %v1545_v3 = vld [vmem:[%s2067_s3 + $0x10] sm:$0xff]   ;;  %p1264_p9 = scmp.ne.s32.totalorder %s1775_s27, 1 }
  0xa5   : > { %1337 = vmatprep.subr.bf16.mxu0 %v1543_v1  ;;  %1433 = vmatprep.subr.bf16.mxu1 %v1543_v1  ;;  %v1546_v4 = vld [vmem:[%s2067_s3 + $0x18] sm:$0xff]   ;;  %v1551_v5 = vld [vmem:[%s2060_s0] sm:$0xff]   ;;  %v1548_v8 = vld [vmem:[%s2067_s3 + $0x28] sm:$0xff]  }
  0xa6   : > { %1338 = vmatpush3.bf16.msra.mxu0 %v1543_v1  ;;  %1441 = vmatpush3.bf16.msra.mxu1 %v1543_v1  ;;  %v1552_v6 = vld [vmem:[%s2060_s0 + $0x20] sm:$0xff]   ;;  %v1549_v9 = vld [vmem:[%s2067_s3 + $0x30] sm:$0xff]   ;;  %v1550_v10 = vld [vmem:[%s2067_s3 + $0x38] sm:$0xff]  }
  0xa7   : > { %1339 = vmatprep.subr.bf16.mxu0 %v1544_v2  ;;  %1434 = vmatprep.subr.bf16.mxu1 %v1544_v2  ;;  %v1547_v7 = vld [vmem:[%s2067_s3 + $0x20] sm:$0xff]   ;;  %v1553_v11 = vld [vmem:[%s2060_s0 + $0x8] sm:$0xff]   ;;  %v1555_v13 = vld [vmem:[%s2060_s0 + $0x10] sm:$0xff]  }
  0xa8   : > { %1353 = vmatprep.mubr.bf16.mxu0 %v1551_v5  ;;  %1361 = vmatprep.mubr.bf16.mxu1 %v1552_v6  ;;  %v1554_v12 = vld [vmem:[%s2060_s0 + $0x28] sm:$0xff]   ;;  %v1556_v14 = vld [vmem:[%s2060_s0 + $0x30] sm:$0xff]   ;;  %v1557_v15 = vld [vmem:[%s2060_s0 + $0x18] sm:$0xff]  }
  0xa9   : > { %v1558_v16 = vld [vmem:[%s2060_s0 + $0x38] sm:$0xff]   ;;  %v401_v17 = vld [vmem:[#allocation2 + $0x10] sm:$0xff]  ;;  %v399_v19 = vld [vmem:[#allocation2] sm:$0xff] }
  0xaa   : > { %1340 = vmatpush3.bf16.msra.mxu0 %v1544_v2  ;;  %1442 = vmatpush3.bf16.msra.mxu1 %v1544_v2  ;;  %v409_v18 = vld [vmem:[#allocation2 + $0x50] sm:$0xff]  ;;  %v407_v20 = vld [vmem:[#allocation2 + $0x40] sm:$0xff]  ;;  %v402_v23 = vld [vmem:[#allocation2 + $0x18] sm:$0xff] }
  0xab   : > { %1341 = vmatprep.subr.bf16.mxu0 %v1545_v3  ;;  %1435 = vmatprep.subr.bf16.mxu1 %v1545_v3  ;;  %v410_v24 = vld [vmem:[#allocation2 + $0x58] sm:$0xff]  ;;  %v400_v29 = vld [vmem:[#allocation2 + $0x8] sm:$0xff]  ;;  %v405_v41 = vld [vmem:[#allocation2 + $0x30] sm:$0xff] }
  0xac   : > { %v408_v30 = vld [vmem:[#allocation2 + $0x48] sm:$0xff]  ;;  %v413_v42 = vld [vmem:[#allocation2 + $0x70] sm:$0xff]  ;;  %v403_v43 = vld [vmem:[#allocation2 + $0x20] sm:$0xff] }
  0xad   : > { %v411_v44 = vld [vmem:[#allocation2 + $0x60] sm:$0xff]  ;;  %v406_v47 = vld [vmem:[#allocation2 + $0x38] sm:$0xff]  ;;  %v404_v53 = vld [vmem:[#allocation2 + $0x28] sm:$0xff] }
  0xae   : > { %1342 = vmatpush3.bf16.msra.mxu0 %v1545_v3  ;;  %1443 = vmatpush3.bf16.msra.mxu1 %v1545_v3  ;;  %v414_v48 = vld [vmem:[#allocation2 + $0x78] sm:$0xff]  ;;  %v412_v54 = vld [vmem:[#allocation2 + $0x68] sm:$0xff]  ;;  %v1559_v1 = vld [vmem:[#allocation8] sm:$0xff] (!%p1264_p9)  }
  0xaf   : > { %1343 = vmatprep.subr.bf16.mxu0 %v1546_v4  ;;  %1436 = vmatprep.subr.bf16.mxu1 %v1546_v4  ;;  %v1560_v2 = vld [vmem:[#allocation8 + $0x8] sm:$0xff] (!%p1264_p9)   ;;  %v1561_v3 = vld [vmem:[#allocation8 + $0x10] sm:$0xff] (!%p1264_p9)  }
  0xb2   : > { %1344 = vmatpush3.bf16.msra.mxu0 %v1546_v4  ;;  %1444 = vmatpush3.bf16.msra.mxu1 %v1546_v4  ;;  %v1562_v4 = vld [vmem:[#allocation8 + $0x18] sm:$0xff] (!%p1264_p9)  }
  0xb3   : > { %1345 = vmatprep.subr.bf16.mxu0 %v1547_v7  ;;  %1437 = vmatprep.subr.bf16.mxu1 %v1547_v7 }
  0xb6   : > { %1346 = vmatpush3.bf16.msra.mxu0 %v1547_v7  ;;  %1445 = vmatpush3.bf16.msra.mxu1 %v1547_v7  ;;  %v2102_v7 = vld [vmem:[%s2169_s2] ss:$0 sm:$0xff] (!%p1264_p9) }
  0xb7   : > { %1347 = vmatprep.subr.bf16.mxu0 %v1548_v8  ;;  %1438 = vmatprep.subr.bf16.mxu1 %v1548_v8 }
  0xba   : > { %1348 = vmatpush3.bf16.msra.mxu0 %v1548_v8  ;;  %1446 = vmatpush3.bf16.msra.mxu1 %v1548_v8 }
  0xbb   : > { %1349 = vmatprep.subr.bf16.mxu0 %v1549_v9  ;;  %1439 = vmatprep.subr.bf16.mxu1 %v1549_v9 }
  0xbe   : > { %1350 = vmatpush3.bf16.msra.mxu0 %v1549_v9  ;;  %1447 = vmatpush3.bf16.msra.mxu1 %v1549_v9 }
  0xbf   : > { %1351 = vmatprep.subr.bf16.mxu0 %v1550_v10  ;;  %1440 = vmatprep.subr.bf16.mxu1 %v1550_v10 }
  0xc2   : > { %1352 = vmatpush3.bf16.msra.mxu0 %v1550_v10  ;;  %1448 = vmatpush3.bf16.msra.mxu1 %v1550_v10 }
  0xc3   : > { %1369 = vmatprep.subr.bf16.mxu0 (!%p1264_p9), %v1559_v1 }
  0xc5   : > { %1354 = vmatmul.mubr.bf16.vlgmr.msra.gmra.mrb[0].mxu0 %v1553_v11  ;;  %1362 = vmatmul.mubr.bf16.vlgmr.msra.gmra.mrb[0].mxu1 %v1554_v12  ;;  %v1563_v12 = vld [vmem:[#allocation8 + $0x20] sm:$0xff] (!%p1264_p9)  }
  0xc6   : > { %1357 = vmatprep.mubr.bf16.mxu0 %v1555_v13  ;;  %1365 = vmatprep.mubr.bf16.mxu1 %v1556_v14  ;;  %v1567_v14 = vld [vmem:[#allocation9] sm:$0xff] (!%p1264_p9)  }
  0xc7   : > { %1370 = vmatpush3.bf16.msra.mxu0 (!%p1264_p9), %v1559_v1  ;;  %1401 = vmatprep.subr.bf16.mxu1 (!%p1264_p9), %v1567_v14 }
  0xc8   : > { %1371 = vmatprep.subr.bf16.mxu0 (!%p1264_p9), %v1560_v2  ;;  %1402 = vmatpush3.bf16.msra.mxu1 (!%p1264_p9), %v1567_v14 }
  0xcb   : > { %1372 = vmatpush3.bf16.msra.mxu0 (!%p1264_p9), %v1560_v2 }
  0xcc   : > { %1373 = vmatprep.subr.bf16.mxu0 (!%p1264_p9), %v1561_v3 }
  0xcd   : > { %1358 = vmatmul.mubr.bf16.gmra.mrb[4].mxu0 %v1557_v15  ;;  %1366 = vmatmul.mubr.bf16.gmra.mrb[4].mxu1 %v1558_v16  ;;  %v1568_v15 = vld [vmem:[#allocation9 + $0x8] sm:$0xff] (!%p1264_p9)  }
  0xce   : > { %v1564_v16 = vld [vmem:[#allocation8 + $0x28] sm:$0xff] (!%p1264_p9)   ;;  %1403 = vmatprep.subr.bf16.mxu1 (!%p1264_p9), %v1568_v15 }
  0xcf   : > { %1374 = vmatpush3.bf16.msra.mxu0 (!%p1264_p9), %v1561_v3  ;;  %1404 = vmatpush3.bf16.msra.mxu1 (!%p1264_p9), %v1568_v15 }
  0xd0   : > { %1375 = vmatprep.subr.bf16.mxu0 (!%p1264_p9), %v1562_v4 }
  0xd3   : > { %1376 = vmatpush3.bf16.msra.mxu0 (!%p1264_p9), %v1562_v4 }
  0xd4   : > { %1377 = vmatprep.subr.bf16.mxu0 (!%p1264_p9), %v1563_v12 }
  0xd7   : > { %1378 = vmatpush3.bf16.msra.mxu0 (!%p1264_p9), %v1563_v12 }
  0xd8   : > { %1379 = vmatprep.subr.bf16.mxu0 (!%p1264_p9), %v1564_v16 }
  0xdb   : > { %1380 = vmatpush3.bf16.msra.mxu0 (!%p1264_p9), %v1564_v16 }
 0x198   : > { %v1355_v21 = vpop.f32.mrb[0].mxu0  ;;  %v1363_v22 = vpop.f32.mrb[0].mxu1 }
 0x199   : > { %v642_v25 = vadd.f32 %v1355_v21, %v401_v17  ;;  %v650_v26 = vadd.f32 %v1363_v22, %v409_v18  ;;  %v577_v27 = vpop.f32.mrb[1].mxu0  ;;  %v609_v28 = vpop.f32.mrb[1].mxu1 }
 0x19a   : > { %v640_v31 = vadd.f32 %v577_v27, %v399_v19  ;;  %v648_v32 = vadd.f32 %v609_v28, %v407_v20  ;;  %v1356_v33 = vpop.f32.mrb[2].mxu0  ;;  %v1364_v34 = vpop.f32.mrb[2].mxu1  ;;  %v1565_v19 = vld [vmem:[#allocation8 + $0x30] sm:$0xff] (!%p1264_p9)   ;;  %v1566_v28 = vld [vmem:[#allocation8 + $0x38] sm:$0xff] (!%p1264_p9)  }
 0x19b   : > { %658 = vst [vmem:[#allocation2 + $0x10] sm:$0xff] %v642_v25  ;;  %666 = vst [vmem:[#allocation2 + $0x50] sm:$0xff] %v650_v26  ;;  %v643_v35 = vadd.f32 %v1356_v33, %v402_v23  ;;  %v651_v36 = vadd.f32 %v1364_v34, %v410_v24  ;;  %v580_v37 = vpop.f32.mrb[3].mxu0  ;;  %v612_v38 = vpop.f32.mrb[3].mxu1  ;;  %v1569_v20 = vld [vmem:[#allocation9 + $0x10] sm:$0xff] (!%p1264_p9)   ;;  %v1570_v25 = vld [vmem:[#allocation9 + $0x18] sm:$0xff] (!%p1264_p9)   ;;  %1381 = vmatprep.subr.bf16.mxu0 (!%p1264_p9), %v1565_v19 }
 0x19c   : > { %656 = vst [vmem:[#allocation2] sm:$0xff] %v640_v31  ;;  %664 = vst [vmem:[#allocation2 + $0x40] sm:$0xff] %v648_v32  ;;  %v641_v39 = vadd.f32 %v580_v37, %v400_v29  ;;  %v649_v40 = vadd.f32 %v612_v38, %v408_v30  ;;  %1405 = vmatprep.subr.bf16.mxu1 (!%p1264_p9), %v1569_v20  ;;  %v1571_v31 = vld [vmem:[#allocation9 + $0x20] sm:$0xff] (!%p1264_p9)   ;;  %1382 = vmatpush3.bf16.msra.mxu0 (!%p1264_p9), %v1565_v19 }
 0x19d   : > { %659 = vst [vmem:[#allocation2 + $0x18] sm:$0xff] %v643_v35  ;;  %667 = vst [vmem:[#allocation2 + $0x58] sm:$0xff] %v651_v36  ;;  %1406 = vmatpush3.bf16.msra.mxu1 (!%p1264_p9), %v1569_v20  ;;  %1383 = vmatprep.subr.bf16.mxu0 (!%p1264_p9), %v1566_v28 }
 0x19e   : > { %657 = vst [vmem:[#allocation2 + $0x8] sm:$0xff] %v641_v39  ;;  %665 = vst [vmem:[#allocation2 + $0x48] sm:$0xff] %v649_v40  ;;  %1407 = vmatprep.subr.bf16.mxu1 (!%p1264_p9), %v1570_v25 }
 0x1a0   : > { %v1359_v45 = vpop.f32.mrb[4].mxu0  ;;  %v1367_v46 = vpop.f32.mrb[4].mxu1  ;;  %675 = sbr.rel (%p1264_p9) target bundleno = 893 (0x37d), region = 72  ;;  %1384 = vmatpush3.bf16.msra.mxu0 (!%p1264_p9), %v1566_v28 }
 0x1a1   : > { %v646_v49 = vadd.f32 %v1359_v45, %v405_v41  ;;  %v654_v50 = vadd.f32 %v1367_v46, %v413_v42  ;;  %v593_v51 = vpop.f32.mrb[5].mxu0  ;;  %v625_v52 = vpop.f32.mrb[5].mxu1  ;;  %1408 = vmatpush3.bf16.msra.mxu1 (!%p1264_p9), %v1570_v25  ;;  %v1572_v41 = vld [vmem:[#allocation9 + $0x28] sm:$0xff] (!%p1264_p9)  }
 0x1a2   : > { %v644_v55 = vadd.f32 %v593_v51, %v403_v43  ;;  %v652_v56 = vadd.f32 %v625_v52, %v411_v44  ;;  %v1360_v57 = vpop.f32.mrb[6].mxu0  ;;  %v1368_v58 = vpop.f32.mrb[6].mxu1  ;;  %v678_v17 = vld [vmem:[#allocation2 + $0x10] sm:$0xff] (!%p1264_p9)  ;;  %1409 = vmatprep.subr.bf16.mxu1 (!%p1264_p9), %v1571_v31 }
 0x1a3   : > { %662 = vst [vmem:[#allocation2 + $0x30] sm:$0xff] %v646_v49  ;;  %670 = vst [vmem:[#allocation2 + $0x70] sm:$0xff] %v654_v50  ;;  %v647_v59 = vadd.f32 %v1360_v57, %v406_v47  ;;  %v655_v60 = vadd.f32 %v1368_v58, %v414_v48  ;;  %v596_v61 = vpop.f32.mrb[7].mxu0  ;;  %v628_v62 = vpop.f32.mrb[7].mxu1  ;;  %v676_v5 = vld [vmem:[#allocation2] sm:$0xff] (!%p1264_p9)  ;;  %v701_v23 = vadd.f32 (!%p1264_p9), %v2102_v7, %v678_v17  ;;  %v686_v49 = vld [vmem:[#allocation2 + $0x50] sm:$0xff] (!%p1264_p9) }
 0x1a4   : > { %660 = vst [vmem:[#allocation2 + $0x20] sm:$0xff] %v644_v55  ;;  %668 = vst [vmem:[#allocation2 + $0x60] sm:$0xff] %v652_v56  ;;  %v645_v63 = vadd.f32 %v596_v61, %v404_v53  ;;  %v653_v0 = vadd.f32 %v628_v62, %v412_v54  ;;  %v699_v8 = vadd.f32 (!%p1264_p9), %v2102_v7, %v676_v5  ;;  %v679_v18 = vld [vmem:[#allocation2 + $0x18] sm:$0xff] (!%p1264_p9)  ;;  %v684_v36 = vld [vmem:[#allocation2 + $0x40] sm:$0xff] (!%p1264_p9) }
 0x1a5   : > { %663 = vst [vmem:[#allocation2 + $0x38] sm:$0xff] %v647_v59  ;;  %671 = vst [vmem:[#allocation2 + $0x78] sm:$0xff] %v655_v60  ;;  %v677_v6 = vld [vmem:[#allocation2 + $0x8] sm:$0xff] (!%p1264_p9)  ;;  %v702_v24 = vadd.f32 (!%p1264_p9), %v2102_v7, %v679_v18  ;;  %v717_v29 = vmax.f32 (!%p1264_p9), %v701_v23, 0.0  ;;  %v707_v43 = vadd.f32 (!%p1264_p9), %v2102_v7, %v684_v36  ;;  %1410 = vmatpush3.bf16.msra.mxu1 (!%p1264_p9), %v1571_v31  ;;  %v687_v50 = vld [vmem:[#allocation2 + $0x58] sm:$0xff] (!%p1264_p9) }
 0x1a6   : > { %661 = vst [vmem:[#allocation2 + $0x28] sm:$0xff] %v645_v63  ;;  %669 = vst [vmem:[#allocation2 + $0x68] sm:$0xff] %v653_v0  ;;  %v700_v9 = vadd.f32 (!%p1264_p9), %v2102_v7, %v677_v6  ;;  %v715_v10 = vmax.f32 (!%p1264_p9), %v699_v8, 0.0  ;;  %v685_v37 = vld [vmem:[#allocation2 + $0x48] sm:$0xff] (!%p1264_p9)  ;;  %1411 = vmatprep.subr.bf16.mxu1 (!%p1264_p9), %v1572_v41  ;;  %v709_v54 = vadd.f32 (!%p1264_p9), %v2102_v7, %v686_v49 }
 0x1a7   : > { %v718_v30 = vmax.f32 %v702_v24, 0.0  ;;  %v708_v44 = vadd.f32 %v2102_v7, %v685_v37  ;;  %v723_v47 = vmax.f32 %v707_v43, 0.0  ;;  %v710_v55 = vadd.f32 %v2102_v7, %v687_v50 }
 0x1a8   : > { %v716_v11 = vmax.f32 %v700_v9, 0.0  ;;  %v725_v59 = vmax.f32 %v709_v54, 0.0  ;;  %v1573_v9 = vld [vmem:[#allocation9 + $0x30] sm:$0xff]  }
 0x1a9   : > { %v732_v38 = vpack.c.bf16 %v718_v30, %v717_v29  ;;  %v724_v48 = vmax.f32 %v708_v44, 0.0  ;;  %1412 = vmatpush3.bf16.msra.mxu1 %v1572_v41  ;;  %v726_v60 = vmax.f32 %v710_v55, 0.0 }
 0x1aa   : > { %v731_v13 = vpack.c.bf16 %v716_v11, %v715_v10  ;;  %v682_v34 = vld [vmem:[#allocation2 + $0x30] sm:$0xff]  ;;  %1413 = vmatprep.subr.bf16.mxu1 %v1573_v9  ;;  %v1574_v10 = vld [vmem:[#allocation9 + $0x38] sm:$0xff]   ;;  %v1266_v11 = vld [vmem:[%s2171_s4] ss:$0 sm:$0xff] }
 0x1ab   : > { %v680_v21 = vld [vmem:[#allocation2 + $0x20] sm:$0xff]  ;;  %v705_v39 = vadd.f32 %v2102_v7, %v682_v34  ;;  %v735_v56 = vpack.c.bf16 %v724_v48, %v723_v47  ;;  %v690_v63 = vld [vmem:[#allocation2 + $0x70] sm:$0xff]  ;;  %v736_v1 = vpack.c.bf16 %v726_v60, %v725_v59 }
 0x1ac   : > { %1385 = vmatprep.mubr.bf16.mxu0 %v731_v13  ;;  %v703_v26 = vadd.f32 %v2102_v7, %v680_v21  ;;  %v683_v35 = vld [vmem:[#allocation2 + $0x38] sm:$0xff]  ;;  %v688_v51 = vld [vmem:[#allocation2 + $0x60] sm:$0xff]  ;;  %v713_v2 = vadd.f32 %v2102_v7, %v690_v63 }
 0x1ad   : > { %v681_v22 = vld [vmem:[#allocation2 + $0x28] sm:$0xff]  ;;  %v706_v40 = vadd.f32 %v2102_v7, %v683_v35  ;;  %1386 = vmatmul.mubr.bf16.vlgmr.msra.gmra.mrb[0].mxu0 %v732_v38  ;;  %v721_v45 = vmax.f32 %v705_v39, 0.0  ;;  %v711_v57 = vadd.f32 %v2102_v7, %v688_v51  ;;  %v691_v0 = vld [vmem:[#allocation2 + $0x78] sm:$0xff]  ;;  %1414 = vmatpush3.bf16.msra.mxu1 %v1573_v9 }
 0x1ae   : > { %v704_v27 = vadd.f32 %v2102_v7, %v681_v22  ;;  %v719_v32 = vmax.f32 %v703_v26, 0.0  ;;  %v689_v52 = vld [vmem:[#allocation2 + $0x68] sm:$0xff]  ;;  %v714_v3 = vadd.f32 %v2102_v7, %v691_v0  ;;  %v729_v5 = vmax.f32 %v713_v2, 0.0  ;;  %1415 = vmatprep.subr.bf16.mxu1 %v1574_v10 }
 0x1af   : > { %v722_v46 = vmax.f32 %v706_v40, 0.0  ;;  %v712_v58 = vadd.f32 %v2102_v7, %v689_v52  ;;  %v727_v61 = vmax.f32 %v711_v57, 0.0 }
 0x1b0   : > { %v720_v33 = vmax.f32 %v704_v27, 0.0  ;;  %v730_v6 = vmax.f32 %v714_v3, 0.0  ;;  %v1275_v3 = vld [vmem:[%s2173_s6] ss:$0 sm:$0xff] }
 0x1b1   : > { %v734_v53 = vpack.c.bf16 %v722_v46, %v721_v45  ;;  %v728_v62 = vmax.f32 %v712_v58, 0.0  ;;  %1416 = vmatpush3.bf16.msra.mxu1 %v1574_v10 }
 0x1b2   : > { %v733_v42 = vpack.c.bf16 %v720_v33, %v719_v32  ;;  %v738_v8 = vpack.c.bf16 %v730_v6, %v729_v5 }
 0x1b3   : > { %v737_v4 = vpack.c.bf16 %v728_v62, %v727_v61 }
 0x1b4   : > { %1389 = vmatprep.mubr.bf16.mxu0 %v733_v42 }
 0x1b5   : > { %1390 = vmatmul.mubr.bf16.gmra.mrb[4].mxu0 %v734_v53 }
 0x1b6   : > { %1393 = vmatprep.mubr.bf16.mxu0 %v735_v56 }
 0x1bd   : > { %1394 = vmatmul.mubr.bf16.gmra.mrb[8].mxu0 %v736_v1 }
 0x1be   : > { %1397 = vmatprep.mubr.bf16.mxu0 %v737_v4 }
 0x1c5   : > { %1398 = vmatmul.mubr.bf16.gmra.mrb[12].mxu0 %v738_v8 }
 0x280   : > { %v1387_v12 = vpop.f32.mrb[0].mxu0 }
 0x281   : > { %v853_v13 = vadd.f32 %v1387_v12, %v1266_v11  ;;  %v844_v7 = vpop.f32.mrb[1].mxu0 }
 0x282   : > { %v845_v14 = vadd.f32 %v1266_v11, %v844_v7  ;;  %v1388_v15 = vpop.f32.mrb[2].mxu0 }
 0x283   : > { %v856_v16 = vadd.f32 %v1388_v15, %v1266_v11  ;;  %v847_v17 = vpop.f32.mrb[3].mxu0  ;;  %v909_v19 = vmax.f32 %v853_v13, 0.0 }
 0x284   : > { %v848_v18 = vadd.f32 %v1266_v11, %v847_v17  ;;  %v907_v21 = vmax.f32 %v845_v14, 0.0 }
 0x285   : > { %v910_v20 = vmax.f32 %v856_v16, 0.0 }
 0x286   : > { %v908_v22 = vmax.f32 %v848_v18, 0.0 }
 0x287   : > { %v924_v23 = vpack.c.bf16 %v910_v20, %v909_v19 }
 0x288   : > { %v1391_v24 = vpop.f32.mrb[4].mxu0  ;;  %v923_v25 = vpack.c.bf16 %v908_v22, %v907_v21 }
 0x289   : > { %v869_v26 = vadd.f32 %v1391_v24, %v1266_v11  ;;  %v860_v27 = vpop.f32.mrb[5].mxu0 }
 0x28a   : > { %v861_v28 = vadd.f32 %v1266_v11, %v860_v27  ;;  %v1392_v29 = vpop.f32.mrb[6].mxu0  ;;  %1417 = vmatprep.mubr.bf16.mxu1 %v923_v25 }
 0x28b   : > { %v872_v30 = vadd.f32 %v1392_v29, %v1266_v11  ;;  %v863_v31 = vpop.f32.mrb[7].mxu0  ;;  %1418 = vmatmul.mubr.bf16.vlgmr.msra.gmra.mrb[0].mxu1 %v924_v23  ;;  %v913_v33 = vmax.f32 %v869_v26, 0.0 }
 0x28c   : > { %v864_v32 = vadd.f32 %v1266_v11, %v863_v31  ;;  %v911_v35 = vmax.f32 %v861_v28, 0.0 }
 0x28d   : > { %v914_v34 = vmax.f32 %v872_v30, 0.0 }
 0x28e   : > { %v912_v36 = vmax.f32 %v864_v32, 0.0 }
 0x28f   : > { %v926_v37 = vpack.c.bf16 %v914_v34, %v913_v33 }
 0x290   : > { %v925_v38 = vpack.c.bf16 %v912_v36, %v911_v35  ;;  %v1395_v39 = vpop.f32.mrb[8].mxu0 }
 0x291   : > { %v885_v40 = vadd.f32 %v1395_v39, %v1266_v11  ;;  %v876_v41 = vpop.f32.mrb[9].mxu0 }
 0x292   : > { %v877_v42 = vadd.f32 %v1266_v11, %v876_v41  ;;  %v1396_v43 = vpop.f32.mrb[10].mxu0  ;;  %1421 = vmatprep.mubr.bf16.mxu1 %v925_v38 }
 0x293   : > { %v888_v44 = vadd.f32 %v1396_v43, %v1266_v11  ;;  %v879_v45 = vpop.f32.mrb[11].mxu0  ;;  %1422 = vmatmul.mubr.bf16.gmra.mrb[4].mxu1 %v926_v37  ;;  %v917_v47 = vmax.f32 %v885_v40, 0.0 }
 0x294   : > { %v880_v46 = vadd.f32 %v1266_v11, %v879_v45  ;;  %v915_v49 = vmax.f32 %v877_v42, 0.0 }
 0x295   : > { %v918_v48 = vmax.f32 %v888_v44, 0.0 }
 0x296   : > { %v916_v50 = vmax.f32 %v880_v46, 0.0 }
 0x297   : > { %v928_v51 = vpack.c.bf16 %v918_v48, %v917_v47 }
 0x298   : > { %v927_v52 = vpack.c.bf16 %v916_v50, %v915_v49  ;;  %v1399_v53 = vpop.f32.mrb[12].mxu0 }
 0x299   : > { %v901_v54 = vadd.f32 %v1399_v53, %v1266_v11  ;;  %v892_v55 = vpop.f32.mrb[13].mxu0 }
 0x29a   : > { %v893_v56 = vadd.f32 %v1266_v11, %v892_v55  ;;  %v1400_v57 = vpop.f32.mrb[14].mxu0  ;;  %1425 = vmatprep.mubr.bf16.mxu1 %v927_v52 }
 0x29b   : > { %v904_v58 = vadd.f32 %v1400_v57, %v1266_v11  ;;  %v895_v59 = vpop.f32.mrb[15].mxu0  ;;  %1426 = vmatmul.mubr.bf16.gmra.mrb[8].mxu1 %v928_v51  ;;  %v921_v61 = vmax.f32 %v901_v54, 0.0 }
 0x29c   : > { %v896_v60 = vadd.f32 %v1266_v11, %v895_v59  ;;  %v919_v63 = vmax.f32 %v893_v56, 0.0 }
 0x29d   : > { %v922_v62 = vmax.f32 %v904_v58, 0.0 }
 0x29e   : > { %v920_v0 = vmax.f32 %v896_v60, 0.0 }
 0x29f   : > { %v930_v1 = vpack.c.bf16 %v922_v62, %v921_v61 }
 0x2a0   : > { %v929_v2 = vpack.c.bf16 %v920_v0, %v919_v63 }
 0x2a2   : > { %1429 = vmatprep.mubr.bf16.mxu1 %v929_v2 }
 0x2a3   : > { %1430 = vmatmul.mubr.bf16.gmra.mrb[12].mxu1 %v930_v1 }
 0x35e   : > { %v1419_v4 = vpop.f32.mrb[0].mxu1 }
 0x35f   : > { %v1045_v5 = vadd.f32 %v1419_v4, %v1275_v3  ;;  %v1036_v6 = vpop.f32.mrb[1].mxu1 }
 0x360   : > { %v1037_v8 = vadd.f32 %v1275_v3, %v1036_v6  ;;  %v1420_v9 = vpop.f32.mrb[2].mxu1 }
 0x361   : > { %1101 = vst [vmem:[#allocation11 + $0x10] sm:$0xff] %v1045_v5  ;;  %v1048_v10 = vadd.f32 %v1420_v9, %v1275_v3  ;;  %v1039_v11 = vpop.f32.mrb[3].mxu1 }
 0x362   : > { %1099 = vst [vmem:[#allocation11] sm:$0xff] %v1037_v8  ;;  %v1040_v12 = vadd.f32 %v1275_v3, %v1039_v11 }
 0x363   : > { %1102 = vst [vmem:[#allocation11 + $0x18] sm:$0xff] %v1048_v10 }
 0x364   : > { %1100 = vst [vmem:[#allocation11 + $0x8] sm:$0xff] %v1040_v12 }
 0x366   : > { %v1423_v13 = vpop.f32.mrb[4].mxu1 }
 0x367   : > { %v1061_v7 = vadd.f32 %v1423_v13, %v1275_v3  ;;  %v1052_v14 = vpop.f32.mrb[5].mxu1 }
 0x368   : > { %v1053_v15 = vadd.f32 %v1275_v3, %v1052_v14  ;;  %v1424_v16 = vpop.f32.mrb[6].mxu1 }
 0x369   : > { %1105 = vst [vmem:[#allocation11 + $0x30] sm:$0xff] %v1061_v7  ;;  %v1064_v17 = vadd.f32 %v1424_v16, %v1275_v3  ;;  %v1055_v18 = vpop.f32.mrb[7].mxu1 }
 0x36a   : > { %1103 = vst [vmem:[#allocation11 + $0x20] sm:$0xff] %v1053_v15  ;;  %v1056_v19 = vadd.f32 %v1275_v3, %v1055_v18 }
 0x36b   : > { %1106 = vst [vmem:[#allocation11 + $0x38] sm:$0xff] %v1064_v17 }
 0x36c   : > { %1104 = vst [vmem:[#allocation11 + $0x28] sm:$0xff] %v1056_v19 }
 0x36e   : > { %v1427_v20 = vpop.f32.mrb[8].mxu1 }
 0x36f   : > { %v1077_v21 = vadd.f32 %v1427_v20, %v1275_v3  ;;  %v1068_v22 = vpop.f32.mrb[9].mxu1 }
 0x370   : > { %v1069_v23 = vadd.f32 %v1275_v3, %v1068_v22  ;;  %v1428_v24 = vpop.f32.mrb[10].mxu1 }
 0x371   : > { %1109 = vst [vmem:[#allocation11 + $0x50] sm:$0xff] %v1077_v21  ;;  %v1080_v25 = vadd.f32 %v1428_v24, %v1275_v3  ;;  %v1071_v26 = vpop.f32.mrb[11].mxu1 }
 0x372   : > { %1107 = vst [vmem:[#allocation11 + $0x40] sm:$0xff] %v1069_v23  ;;  %v1072_v27 = vadd.f32 %v1275_v3, %v1071_v26 }
 0x373   : > { %1110 = vst [vmem:[#allocation11 + $0x58] sm:$0xff] %v1080_v25 }
 0x374   : > { %1108 = vst [vmem:[#allocation11 + $0x48] sm:$0xff] %v1072_v27 }
 0x376   : > { %v1431_v28 = vpop.f32.mrb[12].mxu1 }
 0x377   : > { %v1093_v29 = vadd.f32 %v1431_v28, %v1275_v3  ;;  %v1084_v30 = vpop.f32.mrb[13].mxu1 }
 0x378   : > { %v1085_v31 = vadd.f32 %v1275_v3, %v1084_v30  ;;  %v1432_v32 = vpop.f32.mrb[14].mxu1 }
 0x379   : > { %1113 = vst [vmem:[#allocation11 + $0x70] sm:$0xff] %v1093_v29  ;;  %v1096_v33 = vadd.f32 %v1432_v32, %v1275_v3  ;;  %v1087_v34 = vpop.f32.mrb[15].mxu1 }
 0x37a   : > { %1111 = vst [vmem:[#allocation11 + $0x60] sm:$0xff] %v1085_v31  ;;  %v1088_v35 = vadd.f32 %v1275_v3, %v1087_v34 }
 0x37b   : > { %1114 = vst [vmem:[#allocation11 + $0x78] sm:$0xff] %v1096_v33 }
 0x37c   : > { %1112 = vst [vmem:[#allocation11 + $0x68] sm:$0xff] %v1088_v35 }
 0x37d PF: > { %p1484_p10 = scmp.eq.s32.totalorder %s1865_s30, 1  ;;  %s1793_s23 = smov [#allocation11]  }
 0x37e   : > { %s1124_s11 = sshll.u32 %s1793_s23, 4  ;;  %s1125_s11 = int_to_ptr.vmem [resolvable:$true] %s1124_s11 }
 0x37f   : > { %s1691_s16 = scalar_lea.vmem %s1125_s11, 2048  ;;  %p1698_p1 = scmp.lt.s32.totalorder %s1125_s11, %s1125_s11 }
 0x380   : > { %p1692_p13 = scmp.ne.s32.totalorder %s1125_s11, %s1691_s16  ;;  %p1699_p3 = scmp.lt.s32.totalorder %s1691_s16, %s1691_s16 }
 0x382   : > { %p1693_p8 = pnand %p1692_p13, %p1484_p10  ;;  %p1700_p4 = por %p1699_p3, %p1698_p1 }
 0x384   : > { %p1694_p11 = pneg %p1693_p8 }
 0x386   : > { %p1701_p7 = pnand %p1700_p4, %p1694_p11 }
 0x388   : > { %1704 = shalt.err (!%p1701_p7)
}
 0x389   : > { %s1705_s12 = scalar_lea.hbm %s2174_s7, 2048 }
 0x38a   : > { %p1706_p12 = scmp.ne.s32.totalorder %s2174_s7, %s1705_s12  ;;  %p1711_p2 = scmp.lt.u32.totalorder %s1705_s12, %s2174_s7 }
 0x38c   : > { %p1707_p6 = pnand %p1706_p12, %p1484_p10 }
 0x38e   : > { %p1708_p0 = pneg %p1707_p6 }
 0x390   : > { %p1713_p5 = pnand %p1711_p2, %p1708_p0 }
 0x392   : > { %1716 = shalt.err (!%p1713_p5)
}
 0x393   : > { %s1794_s0 = smov 128   ;;  %s1795_s14 = smov 8  }
 0x394   : > { %1462 = dma.vmem_to_hbm [thread:$0]  (%p1484_p10), %s1125_s11, 2048, %s2174_s7, [#allocation5], %s1794_s0, %s1794_s0, %s1795_s14  }
 0x395   : > { %1758 = dma.done.wait (%p1484_p10), [#allocation5], 2048  }
 0x396   : > { %1760 = vsyncadd (%p1484_p10), [#allocation5], 4294965248 }
 0x397 PF: > { %s25_s29 = sadd.s32 1, %s1783_s29   ;;  %s2204_s9 = sld [smem:[#allocation17_spill]] }
 0x398   : > { %p22_p9 = scmp.ge.s32.totalorder %s25_s29, 4   ;;  %s2205_s24 = smov %s1767_s25 }
 0x399   : > { %s2206_s25 = smov %s1771_s26  ;;  %s2207_s26 = smov %s2016_s18 }
 0x39a   : > { %s2208_s27 = smov %s1779_s28  ;;  %24 = sbr.rel (!%p22_p9) target bundleno = 12 (0xc), region = 115 }
 0x39d   : > { %s2209_s28 = smov %s2204_s9 }
 0x3a1   :  { %1140 = vsyncpa [#allocation4], 1 }
 0x3a2   :  { %1142 = vsyncpa [#allocation4 + $0x1], 1 }
 0x3a3   :  { %1143 = vsyncpa [#allocation7], 1 }
 0x3a4   :  { %1145 = vsyncpa [#allocation7 + $0x1], 1 }
 0x3a5   :  { %1146 = vsyncpa [#allocation10], 1 }
 0x3a6   :  { %1147 = vsyncpa [#allocation5], 1 }
 0x3a7   :  { %1149 = vsyncpa [#allocation5 + $0x1], 1 }

</bundles_post_ra>
